<compile_context>
chip_gen: v7x
topology: tpu7x:2x2x1
jax: 0.10.0
libtpu: 0.0.40
codegen_flags: <defaults>
</compile_context>

<pallas_src>
import functools

import jax
import jax.numpy as jnp
from jax.experimental import pallas as pl
from jax.experimental.pallas import tpu as pltpu


def _ce_kernel(logits_ref, tgt_ref, out_ref, *, n_rows):
    """One row tile: per-block partial sum of (logsumexp(x_i) - x_i[t_i])."""
    pid = pl.program_id(0)

    x = logits_ref[...].astype(jnp.float32)        # (tn, c); bf16 inputs upcast here
    tgt = tgt_ref[...]                             # (tn, 1) int32
    tn, c = x.shape

    # Numerically stable log-sum-exp per row.
    m = jnp.max(x, axis=-1, keepdims=True)         # (tn, 1)  XLU reduce
    p = jnp.exp(x - m)                             # (tn, c)  EUP

    # Class-axis reductions on the (otherwise idle) MXU: row-sum == dot w/ ones.
    ones_col = jnp.ones((c, 1), dtype=jnp.float32)
    sumexp = jnp.dot(p, ones_col, preferred_element_type=jnp.float32)     # (tn, 1)

    # Gather the target logit with a lane-iota mask (no dense one-hot input),
    # reduced on the MXU as well.
    col = jax.lax.broadcasted_iota(jnp.int32, (tn, c), 1)
    hit = jnp.where(col == tgt, x, 0.0)
    picked = jnp.dot(hit, ones_col, preferred_element_type=jnp.float32)   # (tn, 1)

    per_row = m + jnp.log(sumexp) - picked                                # (tn, 1)

    # Ragged trailing block (N % tn != 0): rows >= N hold garbage (possibly
    # Inf/NaN) -> discard via NaN-safe select. Keep this mask.
    row = pid * tn + jax.lax.broadcasted_iota(jnp.int32, (tn, 1), 0)
    per_row = jnp.where(row < n_rows, per_row, 0.0)

    partial = jnp.sum(per_row)                     # scalar partial for this block

    # Emit the partial at [0, 0] of a fully aligned (8, 128) tile (zeros
    # elsewhere); the wrapper sums the tiles. Keeps the output block-spec
    # tile-aligned and the grid axis fully parallel.
    r8 = jax.lax.broadcasted_iota(jnp.int32, (8, 128), 0)
    l128 = jax.lax.broadcasted_iota(jnp.int32, (8, 128), 1)
    out_ref[...] = jnp.where((r8 == 0) & (l128 == 0), partial, jnp.float32(0.0))


def _pick_block_rows(n, c, itemsize, target_block_bytes=4 * 1024 * 1024):
    """Rows per tile so the *lane-padded* VMEM footprint per buffer (logits tile
    + int32 target column) is ~4 MiB: double-buffered this amortizes the
    ~0.35 us per-grid-step overhead while staying well inside v7x's 64 MiB."""
    c_pad = ((c + 127) // 128) * 128               # minor dim pads to 128 lanes
    per_row = c_pad * itemsize + 128 * 4           # logits row + padded int32 target row
    gran = 8 * max(1, 4 // int(itemsize))          # sublane granularity: 8 (f32) / 16 (bf16)
    tn = max(gran, target_block_bytes // per_row)
    n_up = ((n + gran - 1) // gran) * gran
    tn = min(tn, n_up)
    return max(gran, (tn // gran) * gran)


def cross_entropy_loss_pallas(logits, targets, num_classes, reduction="mean",
                              block_rows=None):
    """logits: [N, C] (f32 or bf16), targets: int[N]. Matches the torch forward."""
    assert logits.ndim == 2 and logits.shape[1] == num_classes
    n, c = logits.shape
    itemsize = jnp.dtype(logits.dtype).itemsize

    tn = block_rows if block_rows is not None else _pick_block_rows(n, c, itemsize)
    num_blocks = pl.cdiv(n, tn)

    # int32 target column. No padding of logits/targets: the ragged trailing
    # block is handled by Pallas block padding + the in-kernel row mask.
    tgt_col = targets.astype(jnp.int32).reshape(n, 1)

    # Size the VMEM limit from actual need (double-buffered blocks, lane-padded
    # target column, in-kernel f32 temporaries) rather than a flat 48 MiB;
    # clamp under v7x's 64 MiB physical VMEM.
    c_pad = ((c + 127) // 128) * 128
    vmem_need = (2 * tn * c_pad * itemsize         # logits blocks (double-buffered)
                 + 2 * tn * 128 * 4                # target column blocks (lane-padded)
                 + 4 * tn * c_pad * 4              # f32 temporaries (x, p, hit, iota)
                 + 4 * 1024 * 1024)                # compiler scratch slack
    vmem_limit = int(min(max(vmem_need, 32 * 1024 * 1024), 56 * 1024 * 1024))
    # TODO(synk): for very wide C (LLM vocab ~512K+ at f32) add class-axis
    # tiling with an online logsumexp so the per-block VMEM stays bounded.

    partial_tiles = pl.pallas_call(
        functools.partial(_ce_kernel, n_rows=n),
        out_shape=jax.ShapeDtypeStruct((num_blocks * 8, 128), jnp.float32),
        grid=(num_blocks,),
        in_specs=[
            pl.BlockSpec((tn, c), lambda i: (i, 0)),
            # TODO(synk): lane-dense target layout ((1, tn) blocks + in-kernel
            # relayout) would shave the (tn,128)-padded VMEM column; kept as a
            # sublane column here for guaranteed lowering.
            pl.BlockSpec((tn, 1), lambda i: (i, 0)),
        ],
        out_specs=pl.BlockSpec((8, 128), lambda i: (i, 0)),
        compiler_params=pltpu.CompilerParams(
            dimension_semantics=("parallel",),     # independent per-block partials
            vmem_limit_bytes=vmem_limit,
        ),
        cost_estimate=pl.CostEstimate(
            flops=int(8 * n * c),
            transcendentals=int(n * c),
            bytes_accessed=int(n * c * itemsize + n * 4 + num_blocks * 8 * 128 * 4),
        ),
    )(logits, tgt_col)

    total = jnp.sum(partial_tiles)                 # tiny XLA reduce over per-block partials

    if reduction == "mean":
        return total / jnp.float32(n)
    elif reduction == "sum":
        return total
    else:
        # TODO(synk): reduction='none' (per-sample vector output) not wired up;
        # the reference forward is exercised with 'mean'.
        raise NotImplementedError(reduction)


def _ref_loss(logits, targets, reduction="mean"):
    x = logits.astype(jnp.float32)
    lse = jax.scipy.special.logsumexp(x, axis=-1)
    picked = jnp.take_along_axis(x, targets[:, None].astype(jnp.int32), axis=-1)[:, 0]
    per = lse - picked
    return jnp.mean(per) if reduction == "mean" else jnp.sum(per)


if __name__ == "__main__":
    key = jax.random.PRNGKey(0)
    k1, k2, k3, k4, k5, k6 = jax.random.split(key, 6)

    # Case 1: small shape consistent with the module — batch=8, num_classes=32.
    num_classes = 32
    batch = 8
    logits = jax.random.normal(k1, (batch, num_classes), dtype=jnp.float32)
    targets = jax.random.randint(k2, (batch,), 0, num_classes, dtype=jnp.int32)
    loss = jax.block_until_ready(
        cross_entropy_loss_pallas(logits, targets, num_classes, reduction="mean"))
    ref = _ref_loss(logits, targets, "mean")
    assert jnp.allclose(loss, ref, rtol=1e-5, atol=1e-5), (loss, ref)

    # Case 2: multi-step grid + ragged trailing block (N not a tile multiple).
    n2, c2 = 50, 128
    logits2 = jax.random.normal(k3, (n2, c2), dtype=jnp.float32)
    targets2 = jax.random.randint(k4, (n2,), 0, c2, dtype=jnp.int32)
    loss2 = jax.block_until_ready(
        cross_entropy_loss_pallas(logits2, targets2, c2, reduction="sum",
                                  block_rows=16))
    ref2 = _ref_loss(logits2, targets2, "sum")
    assert jnp.allclose(loss2, ref2, rtol=1e-5, atol=1e-5), (loss2, ref2)

    # Case 3: bf16 logits DMA'd narrow, upcast to f32 in-kernel.
    n3, c3 = 64, 256
    logits3 = jax.random.normal(k5, (n3, c3), dtype=jnp.float32).astype(jnp.bfloat16)
    targets3 = jax.random.randint(k6, (n3,), 0, c3, dtype=jnp.int32)
    loss3 = jax.block_until_ready(
        cross_entropy_loss_pallas(logits3, targets3, c3, reduction="mean"))
    ref3 = _ref_loss(logits3, targets3, "mean")
    assert jnp.allclose(loss3, ref3, rtol=1e-3, atol=1e-3), (loss3, ref3)

    print("KERNEL_OK")
</pallas_src>

<mosaic_0001>
module attributes {stable_mosaic.version = 11 : i64} {
  func.func @_ce_kernel(%arg0: i32, %arg1: memref<8x32xf32, #tpu.memory_space<vmem>>, %arg2: memref<8x1xi32, #tpu.memory_space<vmem>>, %arg3: memref<8x128xf32, #tpu.memory_space<vmem>>) attributes {dimension_semantics = [#tpu.dimension_semantics<parallel>], iteration_bounds = array<i64: 1>, scalar_prefetch = 0 : i64, scratch_operands = 0 : i64, tpu.core_type = #tpu.core_type<tc>, window_params = [{transform_indices = @transform_0, window_bounds = array<i64: 8, 32>}, {transform_indices = @transform_1, window_bounds = array<i64: 8, 1>}, {transform_indices = @transform_2, window_bounds = array<i64: 8, 128>}]} {
    %c0 = arith.constant 0 : index
    %c0_0 = arith.constant 0 : index
    %0 = vector.load %arg1[%c0, %c0_0] : memref<8x32xf32, #tpu.memory_space<vmem>>, vector<8x32xf32>
    %c0_1 = arith.constant 0 : index
    %c0_2 = arith.constant 0 : index
    %1 = vector.load %arg2[%c0_1, %c0_2] : memref<8x1xi32, #tpu.memory_space<vmem>>, vector<8x1xi32>
    %cst = arith.constant dense<0xFF800000> : vector<8xf32>
    %2 = vector.multi_reduction <maximumf>, %0, %cst [1] : vector<8x32xf32> to vector<8xf32>
    %3 = vector.shape_cast %2 : vector<8xf32> to vector<8x1xf32>
    %4 = vector.broadcast %3 : vector<8x1xf32> to vector<8x32xf32>
    %5 = arith.subf %0, %4 : vector<8x32xf32>
    %6 = math.exp %5 : vector<8x32xf32>
    %cst_3 = arith.constant 1.000000e+00 : f32
    %7 = vector.broadcast %cst_3 : f32 to vector<32x1xf32>
    %cst_4 = arith.constant dense<0.000000e+00> : vector<8x1xf32>
    %8 = tpu.matmul %6, %7, %cst_4 {dimension_numbers = #tpu.dot_dimension_numbers<[1], [0], [0], [1], [0, 0, 1, 1], [], []>} : vector<8x32xf32>, vector<32x1xf32>, vector<8x1xf32> -> vector<8x1xf32>
    %9 = tpu.iota {dimensions = array<i32: 1>} : vector<8x32xi32>
    %10 = vector.broadcast %1 : vector<8x1xi32> to vector<8x32xi32>
    %11 = arith.cmpi eq, %9, %10 : vector<8x32xi32>
    %cst_5 = arith.constant 0.000000e+00 : f32
    %12 = vector.broadcast %cst_5 : f32 to vector<8x32xf32>
    %13 = arith.select %11, %0, %12 : vector<8x32xi1>, vector<8x32xf32>
    %cst_6 = arith.constant dense<0.000000e+00> : vector<8x1xf32>
    %14 = tpu.matmul %13, %7, %cst_6 {dimension_numbers = #tpu.dot_dimension_numbers<[1], [0], [0], [1], [0, 0, 1, 1], [], []>} : vector<8x32xf32>, vector<32x1xf32>, vector<8x1xf32> -> vector<8x1xf32>
    %15 = math.log %8 : vector<8x1xf32>
    %16 = arith.addf %3, %15 : vector<8x1xf32>
    %17 = arith.subf %16, %14 : vector<8x1xf32>
    %c8_i32 = arith.constant 8 : i32
    %18 = arith.muli %arg0, %c8_i32 : i32
    %19 = tpu.iota {dimensions = array<i32: 0>} : vector<8x1xi32>
    %20 = vector.broadcast %18 : i32 to vector<8x1xi32>
    %21 = arith.addi %20, %19 : vector<8x1xi32>
    %c8_i32_7 = arith.constant 8 : i32
    %22 = vector.broadcast %c8_i32_7 : i32 to vector<8x1xi32>
    %23 = arith.cmpi slt, %21, %22 : vector<8x1xi32>
    %cst_8 = arith.constant 0.000000e+00 : f32
    %24 = vector.broadcast %cst_8 : f32 to vector<8x1xf32>
    %25 = arith.select %23, %17, %24 : vector<8x1xi1>, vector<8x1xf32>
    %26 = vector.shape_cast %25 : vector<8x1xf32> to vector<1x8x1xf32>
    %cst_9 = arith.constant dense<0.000000e+00> : vector<1xf32>
    %27 = vector.multi_reduction <add>, %26, %cst_9 [1, 2] : vector<1x8x1xf32> to vector<1xf32>
    %28 = vector.shape_cast %27 : vector<1xf32> to vector<1x1x1xf32>
    %29 = vector.extract %28[0, 0, 0] : f32 from vector<1x1x1xf32>
    %30 = tpu.iota {dimensions = array<i32: 0>} : vector<8x128xi32>
    %31 = tpu.iota {dimensions = array<i32: 1>} : vector<8x128xi32>
    %c0_i32 = arith.constant 0 : i32
    %32 = vector.broadcast %c0_i32 : i32 to vector<8x128xi32>
    %33 = arith.cmpi eq, %30, %32 : vector<8x128xi32>
    %c0_i32_10 = arith.constant 0 : i32
    %34 = vector.broadcast %c0_i32_10 : i32 to vector<8x128xi32>
    %35 = arith.cmpi eq, %31, %34 : vector<8x128xi32>
    %36 = arith.andi %33, %35 : vector<8x128xi1>
    %cst_11 = arith.constant 0.000000e+00 : f32
    %37 = vector.broadcast %29 : f32 to vector<8x128xf32>
    %38 = vector.broadcast %cst_11 : f32 to vector<8x128xf32>
    %39 = arith.select %36, %37, %38 : vector<8x128xi1>, vector<8x128xf32>
    %c0_12 = arith.constant 0 : index
    %c0_13 = arith.constant 0 : index
    %40 = vector.load %arg3[%c0_12, %c0_13] : memref<8x128xf32, #tpu.memory_space<vmem>>, vector<8x128xf32>
    tpu.vector_store %arg3[%c0_12, %c0_13], %39 {strides = array<i32>} : memref<8x128xf32, #tpu.memory_space<vmem>>, vector<8x128xf32>,
    return
  }
  func.func @transform_0(%arg0: i32) -> (i32, i32) {
    %c0_i32 = arith.constant 0 : i32
    %c0_i32_0 = arith.constant 0 : i32
    return %arg0, %c0_i32 : i32, i32
  }
  func.func @transform_1(%arg0: i32) -> (i32, i32) {
    %c0_i32 = arith.constant 0 : i32
    %c0_i32_0 = arith.constant 0 : i32
    return %arg0, %c0_i32 : i32, i32
  }
  func.func @transform_2(%arg0: i32) -> (i32, i32) {
    %c0_i32 = arith.constant 0 : i32
    %c0_i32_0 = arith.constant 0 : i32
    return %arg0, %c0_i32 : i32, i32
  }
}

</mosaic_0001>

<bundles_post_ra>
// kernel: tpu_custom_call.1
= control target key start
LH: loop header
LB: loop body
LE: loop exit
PB: predicated region body
PF: predicated region fallthrough
CT: control target
= control target key end

     0   :  { %vm14_vm0 = vcmask 261120   ;;  %s337_s0 = inlined_call_operand.vmem [shape: f32[8,32], index: 0, kind: input, shape index: {}]   ;;  %s338_s1 = inlined_call_operand.vmem [shape: s32[8,1], index: 1, kind: input, shape index: {}]   ;;  %s339_s2 = inlined_call_operand.hbm [shape: f32[8,128], index: 2, kind: output, shape index: {}]  }
   0x1   :  { %v12_v0 = vld [vmem:[%s337_s0] sm:$0xff] }
   0x2   :  { %7 = vsyncpa [#allocation3], 0  ;;  %v15_v1 = vsel %vm14_vm0, %v12_v0, -inf  ;;  %v295_v2 = vmov 0   ;;  %v13_v3 = vld [vmem:[%s338_s1] sm:$0xff]  ;;  %v296_v4 = vmov 0.0|0.0   ;;  %v94_v9 = vlaneseq }
   0x3   :  { %266 = vset.pattern.permute.xlu0 %v295_v2  ;;  %250 = vmatprep.subr.bf16.mxu0 %v296_v4  ;;  %vm297_vm1 = vmmov 0   ;;  %v298_v5 = vmov 0.0   ;;  %v299_v6 = vmov 1.0|1.0   ;;  %vm185_vm3 = vcmask 7168   ;;  %s300_s0 = smov [#allocation2]  }
   0x4   :  { %16 = vmax.xlane.f32.xlu0 %v15_v1  ;;  %236 = vmatprep.mubr.msk.f32.mxu0 %vm297_vm1, %v298_v5  ;;  %v95_v11 = vand.u32 127, %v94_v9  ;;  %v180_v31 = vshrl.u32 %v94_v9, 7  ;;  %s208_s1 = sshll.u32 %s300_s0, 4  ;;  %s209_s1 = int_to_ptr.vmem [resolvable:$true] %s208_s1 }
   0x5   :  { %251 = vmatpush3.bf16.msra.mxu0 %v299_v6  ;;  %254 = vmatprep.subr.bf16.mxu1 %v296_v4  ;;  %s271_s14 = scalar_lea.vmem %s209_s1, 128  ;;  %p276_p1 = scmp.lt.s32.totalorder %s209_s1, %s209_s1 }
   0x6   :  { %252 = vmatprep.subr.bf16.mxu0 %v296_v4  ;;  %255 = vmatpush3.bf16.msra.mxu1 %v299_v6  ;;  %vm196_vm4 = vcmp.eq.s32.totalorder %v180_v31, 0  ;;  %vm197_vm5 = vcmp.eq.s32.totalorder %v95_v11, 0  ;;  %p272_p0 = scmp.ne.s32.totalorder %s209_s1, %s271_s14  ;;  %p277_p2 = scmp.lt.s32.totalorder %s271_s14, %s271_s14 }
   0x7   :  { %256 = vmatprep.subr.bf16.mxu1 %v296_v4  ;;  %247 = vmatprep.mubr.msk.f32.mxu1 %vm297_vm1, %v298_v5  ;;  %vm198_vm6 = vmand %vm196_vm4, %vm197_vm5 }
   0x8   :  { %p278_p3 = por %p277_p2, %p276_p1 }
   0x9   :  { %253 = vmatpush3.bf16.msra.mxu0 %v299_v6 }
   0xa   :  { %257 = vmatpush3.bf16.msra.mxu1 %v299_v6  ;;  %p279_p4 = pnand %p278_p3, %p272_p0 }
  0x1a   :  { %97 = vperm.xlu0 %266, %v13_v3  }
  0x91   :  { %v17_v7 = vpop.xlane.xlu0 %16 }
  0x92   :  { %v18_v8 = vsub.f32 %v12_v0, %v17_v7 }
  0x94   :  { %v19_v10 = vmul.f32 1.442695, %v18_v8 }
  0x96   :  { %267 = vpow2.f32 %v19_v10 }
  0x99   :  { %v98_v12 = vpop.permute.xlu0 %97 }
  0x9a   :  { %vm99_vm2 = vcmp.eq.s32.totalorder %v95_v11, %v98_v12 }
  0x9b   :  { %v100_v13 = vsel %vm99_vm2, %v12_v0, 0.0 }
  0x9c   :  { %248 = vmatmul.mubr.msk.f32.vlgmr.msra.gmra.mrb[0].mxu1 %vm14_vm0, %v100_v13 }
  0xa0   :  { %v268_v14 = vpop.eup %267 }
  0xa1   :  { %237 = vmatmul.mubr.msk.f32.vlgmr.msra.gmra.mrb[0].mxu0 %vm14_vm0, %v268_v14 }
 0x16f   :  { %v170_v15 = vpop.f32.mrb[0].mxu1 }
 0x170   :  { %v249_v16 = vpop.f32.mrb[1].mxu1 }
 0x174   :  { %v90_v17 = vpop.f32.mrb[0].mxu0 }
 0x175   :  { %269 = vlog2.f32 %v90_v17  ;;  %v238_v18 = vpop.f32.mrb[1].mxu0 }
 0x17f   :  { %v270_v19 = vpop.eup %269 }
 0x180   :  { %v175_v20 = vmul.f32 0.6931472, %v270_v19 }
 0x182   :  { %v176_v21 = vadd.f32 %v175_v20, %v17_v7 }
 0x184   :  { %v177_v22 = vsub.f32 %v176_v21, %v170_v15 }
 0x186   :  { %v186_v23 = vsel %vm185_vm3, %v177_v22, 0.0 }
 0x187   :  { %187 = vadd.xlane.f32.xlu1 %v186_v23 }
 0x214   :  { %v188_v24 = vpop.xlane.xlu1 %187 }
 0x215   :  { %v189_v25 = vrot.slane %v188_v24, 4 }
 0x217   :  { %v190_v26 = vadd.f32 %v189_v25, %v188_v24 }
 0x219   :  { %v191_v27 = vrot.slane %v190_v26, 2 }
 0x21b   :  { %v192_v28 = vadd.f32 %v191_v27, %v190_v26 }
 0x21d   :  { %v193_v29 = vrot.slane %v192_v28, 1 }
 0x21f   :  { %v194_v30 = vadd.f32 %v193_v29, %v192_v28 }
 0x221   :  { %258 = vpush %v194_v30 }
 0x252   :  { %s259_s13 = spop %258 }
 0x253   :  { %v199_v32 = vstv %s259_s13 }
 0x254   :  { %v200_v33 = vsel %vm198_vm6, %v199_v32, 0.0 }
 0x255   :  { %201 = vst [vmem:[#allocation2] sm:$0xff] %v200_v33 }
 0x256   :  { %282 = shalt.err (!%p279_p4)
}
 0x257   :  { %s283_s17 = scalar_lea.hbm %s339_s2, 128 }
 0x258   :  { %p284_p5 = scmp.ne.s32.totalorder %s339_s2, %s283_s17  ;;  %p287_p6 = scmp.lt.u32.totalorder %s283_s17, %s339_s2 }
 0x25a   :  { %p289_p7 = pnand %p287_p6, %p284_p5 }
 0x25c   :  { %292 = shalt.err (!%p289_p7)
}
 0x25d   :  { %211 = dma.vmem_to_hbm [thread:$0]  %s209_s1, 128, %s339_s2, [#allocation3]  }
 0x25e   :  { %293 = dma.done.wait [#allocation3], 128  }
 0x25f   :  { %294 = vsyncadd [#allocation3], 4294967168 }
 0x260   :  { %215 = vsyncpa [#allocation3], 1 }

</bundles_post_ra>
